<compile_context>
chip_gen: v7x
topology: tpu7x:2x2x1
jax: 0.10.0
libtpu: 0.0.40
codegen_flags: <defaults>
</compile_context>

<pallas_src>
import functools

import jax
import jax.numpy as jnp
from jax.experimental import pallas as pl
from jax.experimental.pallas import tpu as pltpu

_HI = jax.lax.Precision.HIGHEST


def mlp_kernel(x_ref, w1_ref, b1_ref, w2_ref, b2_ref, w3_ref, b3_ref, o_ref):
    # x_ref: (TB, 5) native layout (batch on sublanes, features on lanes).
    # All activations are (features, TB): batch on lanes -> lane-dense stores.
    x = x_ref[...]

    # Layer 1: Linear(5 -> 32) + ReLU.  Contract the 5-feature dim of both
    # operands (w1 is torch-native (32, 5)); the RHS transpose rides the XLU.
    h1 = jax.lax.dot_general(
        w1_ref[...], x,
        dimension_numbers=(((1,), (1,)), ((), ())),
        preferred_element_type=jnp.float32,
        precision=_HI,
    )                                                       # (32, TB)
    h1 = jnp.maximum(h1 + b1_ref[...], 0.0)

    # Layer 2: Linear(32 -> 64) + ReLU.
    h2 = jnp.dot(w2_ref[...], h1,
                 preferred_element_type=jnp.float32, precision=_HI)  # (64, TB)
    h2 = jnp.maximum(h2 + b2_ref[...], 0.0)

    # Layer 3: Linear(64 -> 1) + Sigmoid.  Output stays a single row; lanes are
    # dense (TB is a multiple of 128).  Sigmoid goes to the EUP (free slot).
    logits = jnp.dot(w3_ref[...], h2,
                     preferred_element_type=jnp.float32, precision=_HI)  # (1, TB)
    o_ref[...] = jax.nn.sigmoid(logits + b3_ref[...])


@functools.partial(jax.jit, static_argnames=("tb",))
def mnetwork_forward(x, params, *, tb=1024):
    """x: (B, 5) float32 -> (B, 1) float32.  Matches MNetwork.forward."""
    w1, b1, w2, b2, w3, b3 = params  # PyTorch-native shapes
    B, K = x.shape

    # Batch tile (lane axis of the activations).  Clamp for tiny batches, and
    # keep >= 2 grid steps when possible so v7x's 2nd TensorCore gets work.
    b_128 = pl.cdiv(B, 128) * 128
    tb = max(128, min(tb, b_128))
    if b_128 >= 2 * 128:
        tb = min(tb, max(128, (b_128 // 2 // 128) * 128))
    b_pad = pl.cdiv(B, tb) * tb

    # Pad only what the tiling requires (batch rows); this is a no-op when B is
    # already a multiple of tb.  x stays in its native (B, 5) layout -- no
    # host-side transpose (it would be an un-fused extra HBM pass).
    xp = x if b_pad == B else jnp.pad(x, ((0, b_pad - B), (0, 0)))

    # Biases as 2-D columns for lane broadcast; w3/b3 stay unpadded (1, 64)/(1, 1).
    b1c = b1.reshape(-1, 1)
    b2c = b2.reshape(-1, 1)
    b3c = b3.reshape(-1, 1)

    # Weights/biases: constant block index -> DMA'd once, VMEM-resident.
    resident = lambda a: pl.BlockSpec(a.shape, lambda i: (0, 0))

    out = pl.pallas_call(
        mlp_kernel,
        out_shape=jax.ShapeDtypeStruct((1, b_pad), jnp.float32),
        grid=(b_pad // tb,),
        in_specs=[
            pl.BlockSpec((tb, K), lambda i: (i, 0)),  # native-layout x tile
            resident(w1), resident(b1c),
            resident(w2), resident(b2c),
            resident(w3), resident(b3c),
        ],
        out_specs=pl.BlockSpec((1, tb), lambda i: (0, i)),
        compiler_params=pltpu.CompilerParams(
            dimension_semantics=("parallel",)),
    )(xp, w1, b1c, w2, b2c, w3, b3c)

    # Row 0 holds the real 1-wide output; drop padded batch columns.
    return out[0, :B].reshape(B, 1)


def init_params(key):
    """Deterministic init matching torch.nn.Linear shapes (out, in) / (out,)."""
    ks = jax.random.split(key, 6)

    def linear(kw, kb, fan_in, fan_out):
        bound = 1.0 / float(fan_in) ** 0.5
        w = jax.random.uniform(kw, (fan_out, fan_in), jnp.float32, -bound, bound)
        b = jax.random.uniform(kb, (fan_out,), jnp.float32, -bound, bound)
        return w, b

    w1, b1 = linear(ks[0], ks[1], 5, 32)
    w2, b2 = linear(ks[2], ks[3], 32, 64)
    w3, b3 = linear(ks[4], ks[5], 64, 1)
    return (w1, b1, w2, b2, w3, b3)


def reference_forward(x, params):
    w1, b1, w2, b2, w3, b3 = params
    h = jnp.maximum(jnp.dot(x, w1.T, precision=_HI) + b1, 0.0)
    h = jnp.maximum(jnp.dot(h, w2.T, precision=_HI) + b2, 0.0)
    return jax.nn.sigmoid(jnp.dot(h, w3.T, precision=_HI) + b3)


if __name__ == "__main__":
    key = jax.random.PRNGKey(0)
    kx, kp = jax.random.split(key)

    B = 8  # small batch consistent with Linear(5, ...) input
    x = jax.random.normal(kx, (B, 5), jnp.float32)
    params = init_params(kp)

    out = mnetwork_forward(x, params)
    out = jax.block_until_ready(out)

    ref = reference_forward(x, params)
    assert out.shape == (B, 1)
    assert jnp.allclose(out, ref, atol=1e-5, rtol=1e-5)

    print("KERNEL_OK")
</pallas_src>

<mosaic_0001>
module attributes {stable_mosaic.version = 11 : i64} {
  func.func @mlp_kernel(%arg0: i32, %arg1: memref<128x5xf32, #tpu.memory_space<vmem>>, %arg2: memref<32x5xf32, #tpu.memory_space<vmem>>, %arg3: memref<32x1xf32, #tpu.memory_space<vmem>>, %arg4: memref<64x32xf32, #tpu.memory_space<vmem>>, %arg5: memref<64x1xf32, #tpu.memory_space<vmem>>, %arg6: memref<1x64xf32, #tpu.memory_space<vmem>>, %arg7: memref<1x1xf32, #tpu.memory_space<vmem>>, %arg8: memref<1x128xf32, #tpu.memory_space<vmem>>) attributes {dimension_semantics = [#tpu.dimension_semantics<parallel>], iteration_bounds = array<i64: 1>, scalar_prefetch = 0 : i64, scratch_operands = 0 : i64, tpu.core_type = #tpu.core_type<tc>, window_params = [{transform_indices = @transform_0, window_bounds = array<i64: 128, 5>}, {pipeline_mode = #tpu.pipeline_mode<synchronous>, transform_indices = @transform_1, window_bounds = array<i64: 32, 5>}, {pipeline_mode = #tpu.pipeline_mode<synchronous>, transform_indices = @transform_2, window_bounds = array<i64: 32, 1>}, {pipeline_mode = #tpu.pipeline_mode<synchronous>, transform_indices = @transform_3, window_bounds = array<i64: 64, 32>}, {pipeline_mode = #tpu.pipeline_mode<synchronous>, transform_indices = @transform_4, window_bounds = array<i64: 64, 1>}, {pipeline_mode = #tpu.pipeline_mode<synchronous>, transform_indices = @transform_5, window_bounds = array<i64: 1, 64>}, {pipeline_mode = #tpu.pipeline_mode<synchronous>, transform_indices = @transform_6, window_bounds = array<i64: 1, 1>}, {transform_indices = @transform_7, window_bounds = array<i64: 1, 128>}]} {
    %c0 = arith.constant 0 : index
    %c0_0 = arith.constant 0 : index
    %0 = vector.load %arg1[%c0, %c0_0] : memref<128x5xf32, #tpu.memory_space<vmem>>, vector<128x5xf32>
    %c0_1 = arith.constant 0 : index
    %c0_2 = arith.constant 0 : index
    %1 = vector.load %arg2[%c0_1, %c0_2] : memref<32x5xf32, #tpu.memory_space<vmem>>, vector<32x5xf32>
    %cst = arith.constant dense<0.000000e+00> : vector<32x128xf32>
    %2 = tpu.matmul %1, %0, %cst {dimension_numbers = #tpu.dot_dimension_numbers<[1], [1], [0], [0], [0, 0, 1, 0], [], []>, precision = #tpu.contract_precision<fp32>} : vector<32x5xf32>, vector<128x5xf32>, vector<32x128xf32> -> vector<32x128xf32>
    %c0_3 = arith.constant 0 : index
    %c0_4 = arith.constant 0 : index
    %3 = vector.load %arg3[%c0_3, %c0_4] : memref<32x1xf32, #tpu.memory_space<vmem>>, vector<32x1xf32>
    %4 = vector.broadcast %3 : vector<32x1xf32> to vector<32x128xf32>
    %5 = arith.addf %2, %4 : vector<32x128xf32>
    %cst_5 = arith.constant 0.000000e+00 : f32
    %6 = vector.broadcast %cst_5 : f32 to vector<32x128xf32>
    %7 = arith.maximumf %5, %6 : vector<32x128xf32>
    %c0_6 = arith.constant 0 : index
    %c0_7 = arith.constant 0 : index
    %8 = vector.load %arg4[%c0_6, %c0_7] : memref<64x32xf32, #tpu.memory_space<vmem>>, vector<64x32xf32>
    %cst_8 = arith.constant dense<0.000000e+00> : vector<64x128xf32>
    %9 = tpu.matmul %8, %7, %cst_8 {dimension_numbers = #tpu.dot_dimension_numbers<[1], [0], [0], [1], [0, 0, 1, 1], [], []>, precision = #tpu.contract_precision<fp32>} : vector<64x32xf32>, vector<32x128xf32>, vector<64x128xf32> -> vector<64x128xf32>
    %c0_9 = arith.constant 0 : index
    %c0_10 = arith.constant 0 : index
    %10 = vector.load %arg5[%c0_9, %c0_10] : memref<64x1xf32, #tpu.memory_space<vmem>>, vector<64x1xf32>
    %11 = vector.broadcast %10 : vector<64x1xf32> to vector<64x128xf32>
    %12 = arith.addf %9, %11 : vector<64x128xf32>
    %cst_11 = arith.constant 0.000000e+00 : f32
    %13 = vector.broadcast %cst_11 : f32 to vector<64x128xf32>
    %14 = arith.maximumf %12, %13 : vector<64x128xf32>
    %c0_12 = arith.constant 0 : index
    %c0_13 = arith.constant 0 : index
    %15 = vector.load %arg6[%c0_12, %c0_13] : memref<1x64xf32, #tpu.memory_space<vmem>>, vector<1x64xf32>
    %cst_14 = arith.constant dense<0.000000e+00> : vector<1x128xf32>
    %16 = tpu.matmul %15, %14, %cst_14 {dimension_numbers = #tpu.dot_dimension_numbers<[1], [0], [0], [1], [0, 0, 1, 1], [], []>, precision = #tpu.contract_precision<fp32>} : vector<1x64xf32>, vector<64x128xf32>, vector<1x128xf32> -> vector<1x128xf32>
    %c0_15 = arith.constant 0 : index
    %c0_16 = arith.constant 0 : index
    %17 = vector.load %arg7[%c0_15, %c0_16] : memref<1x1xf32, #tpu.memory_space<vmem>>, vector<1x1xf32>
    %18 = vector.broadcast %17 : vector<1x1xf32> to vector<1x128xf32>
    %19 = arith.addf %16, %18 : vector<1x128xf32>
    %20 = arith.negf %19 : vector<1x128xf32>
    %21 = math.exp %20 : vector<1x128xf32>
    %cst_17 = arith.constant 1.000000e+00 : f32
    %22 = vector.broadcast %cst_17 : f32 to vector<1x128xf32>
    %23 = arith.addf %22, %21 : vector<1x128xf32>
    %24 = arith.divf %22, %23 : vector<1x128xf32>
    %c0_18 = arith.constant 0 : index
    %c0_19 = arith.constant 0 : index
    %25 = vector.load %arg8[%c0_18, %c0_19] : memref<1x128xf32, #tpu.memory_space<vmem>>, vector<1x128xf32>
    tpu.vector_store %arg8[%c0_18, %c0_19], %24 {strides = array<i32>} : memref<1x128xf32, #tpu.memory_space<vmem>>, vector<1x128xf32>,
    return
  }
  func.func @transform_0(%arg0: i32) -> (i32, i32) {
    %c0_i32 = arith.constant 0 : i32
    %c0_i32_0 = arith.constant 0 : i32
    return %arg0, %c0_i32 : i32, i32
  }
  func.func @transform_1(%arg0: i32) -> (i32, i32) {
    %c0_i32 = arith.constant 0 : i32
    %c0_i32_0 = arith.constant 0 : i32
    %c0_i32_1 = arith.constant 0 : i32
    return %c0_i32, %c0_i32_0 : i32, i32
  }
  func.func @transform_2(%arg0: i32) -> (i32, i32) {
    %c0_i32 = arith.constant 0 : i32
    %c0_i32_0 = arith.constant 0 : i32
    %c0_i32_1 = arith.constant 0 : i32
    return %c0_i32, %c0_i32_0 : i32, i32
  }
  func.func @transform_3(%arg0: i32) -> (i32, i32) {
    %c0_i32 = arith.constant 0 : i32
    %c0_i32_0 = arith.constant 0 : i32
    %c0_i32_1 = arith.constant 0 : i32
    return %c0_i32, %c0_i32_0 : i32, i32
  }
  func.func @transform_4(%arg0: i32) -> (i32, i32) {
    %c0_i32 = arith.constant 0 : i32
    %c0_i32_0 = arith.constant 0 : i32
    %c0_i32_1 = arith.constant 0 : i32
    return %c0_i32, %c0_i32_0 : i32, i32
  }
  func.func @transform_5(%arg0: i32) -> (i32, i32) {
    %c0_i32 = arith.constant 0 : i32
    %c0_i32_0 = arith.constant 0 : i32
    %c0_i32_1 = arith.constant 0 : i32
    return %c0_i32, %c0_i32_0 : i32, i32
  }
  func.func @transform_6(%arg0: i32) -> (i32, i32) {
    %c0_i32 = arith.constant 0 : i32
    %c0_i32_0 = arith.constant 0 : i32
    %c0_i32_1 = arith.constant 0 : i32
    return %c0_i32, %c0_i32_0 : i32, i32
  }
  func.func @transform_7(%arg0: i32) -> (i32, i32) {
    %c0_i32 = arith.constant 0 : i32
    %c0_i32_0 = arith.constant 0 : i32
    return %c0_i32, %arg0 : i32, i32
  }
}

</mosaic_0001>

<bundles_post_ra>
// kernel: mnetwork_forward.1
= control target key start
LH: loop header
LB: loop body
LE: loop exit
PB: predicated region body
PF: predicated region fallthrough
CT: control target
= control target key end

     0   :  { %vm72_vm0 = vcmask 39936   ;;  %vm963_vm1 = vcmask 261120   ;;  %vm3460_vm2 = vmmov 0   ;;  %vm1793_vm3 = vcmask 523264   ;;  %s4192_s0 = inlined_call_operand.vmem [shape: f32[128,5], index: 0, kind: input, shape index: {}]   ;;  %s4193_s1 = inlined_call_operand.vmem [shape: f32[32,5], index: 1, kind: input, shape index: {}]   ;;  %s4194_s2 = inlined_call_operand.vmem [shape: f32[32,1], index: 2, kind: input, shape index: {}]   ;;  %s4195_s6 = inlined_call_operand.<no memory space> [shape: f32[1,1], index: 6, kind: input, shape index: {}]   ;;  %s4196_s4 = inlined_call_operand.vmem [shape: f32[64,1], index: 4, kind: input, shape index: {}]   ;;  %s4197_s3 = inlined_call_operand.vmem [shape: f32[64,32], index: 3, kind: input, shape index: {}]   ;;  %s4198_s5 = inlined_call_operand.vmem [shape: f32[1,64], index: 5, kind: input, shape index: {}]   ;;  %s4199_s7 = inlined_call_operand.vmem [shape: f32[1,128], index: 7, kind: output, shape index: {}]  }
   0x1   :  { %v28_v0 = vld [vmem:[%s4192_s0] sm:$0xff]  ;;  %v29_v1 = vld [vmem:[%s4192_s0 + $0x8] sm:$0xff]  ;;  %v30_v2 = vld [vmem:[%s4192_s0 + $0x10] sm:$0xff] }
   0x2   :  { %v86_v3 = vsel %vm72_vm0, %v28_v0, 0  ;;  %v89_v4 = vsel %vm72_vm0, %v29_v1, 0  ;;  %v31_v5 = vld [vmem:[%s4192_s0 + $0x18] sm:$0xff]  ;;  %v92_v6 = vsel %vm72_vm0, %v30_v2, 0  ;;  %v32_v7 = vld [vmem:[%s4192_s0 + $0x20] sm:$0xff]  ;;  %v33_v8 = vld [vmem:[%s4192_s0 + $0x28] sm:$0xff] }
   0x3   :  { %v134_v9 = vand.u32 4294901760, %v86_v3  ;;  %v137_v10 = vand.u32 4294901760, %v89_v4  ;;  %v95_v11 = vsel %vm72_vm0, %v31_v5, 0  ;;  %v140_v12 = vand.u32 4294901760, %v92_v6  ;;  %v34_v26 = vld [vmem:[%s4192_s0 + $0x30] sm:$0xff]  ;;  %v35_v27 = vld [vmem:[%s4192_s0 + $0x38] sm:$0xff] }
   0x4   :  { %v143_v13 = vand.u32 4294901760, %v95_v11  ;;  %v98_v14 = vsel %vm72_vm0, %v32_v7, 0  ;;  %v101_v15 = vsel %vm72_vm0, %v33_v8, 0  ;;  %v104_v30 = vsel %vm72_vm0, %v34_v26, 0  ;;  %v44_v32 = vld [vmem:[%s4193_s1] sm:$0xff]  ;;  %v37_v39 = vld [vmem:[%s4192_s0 + $0x48] sm:$0xff] }
   0x5   :  { %v3526_v16 = vpack.c.bf16 %v137_v10, %v134_v9  ;;  %v3528_v17 = vsub.f32 %v86_v3, %v134_v9  ;;  %v3530_v18 = vsub.f32 %v89_v4, %v137_v10  ;;  %v3532_v19 = vsub.f32 %v92_v6, %v140_v12  ;;  %v36_v38 = vld [vmem:[%s4192_s0 + $0x40] sm:$0xff]  ;;  %v38_v58 = vld [vmem:[%s4192_s0 + $0x50] sm:$0xff]  ;;  %v39_v59 = vld [vmem:[%s4192_s0 + $0x58] sm:$0xff] }
   0x6   :  { %v3534_v20 = vpack.c.bf16 %v143_v13, %v140_v12  ;;  %v3536_v21 = vsub.f32 %v95_v11, %v143_v13  ;;  %v146_v23 = vand.u32 4294901760, %v98_v14  ;;  %v149_v24 = vand.u32 4294901760, %v101_v15  ;;  %v40_v13 = vld [vmem:[%s4192_s0 + $0x60] sm:$0xff] }
   0x7   :  { %v3118_v22 = vpack.c.bf16 %v3530_v18, %v3528_v17  ;;  %3055 = vmatprep.subr.bf16.mxu1 %v3526_v16  ;;  %v107_v31 = vsel %vm72_vm0, %v35_v27, 0  ;;  %v152_v35 = vand.u32 4294901760, %v104_v30  ;;  %v74_v37 = vsel %vm72_vm0, %v44_v32, 0 }
   0x8   :  { %v3122_v25 = vpack.c.bf16 %v3536_v21, %v3532_v19  ;;  %3057 = vmatpush3.bf16.xpose.msra.mxu1 %v3526_v16  ;;  %v3551_v28 = vsub.f32 %v98_v14, %v146_v23  ;;  %v3553_v29 = vsub.f32 %v101_v15, %v149_v24  ;;  %v3560_v33 = vpack.c.bf16 %v149_v24, %v146_v23  ;;  %v41_v14 = vld [vmem:[%s4192_s0 + $0x68] sm:$0xff] }
   0x9   :  { %3119 = vmatprep.subr.bf16.mxu0 %v3118_v22  ;;  %3059 = vmatprep.subr.bf16.mxu1 %v3534_v20  ;;  %v155_v36 = vand.u32 4294901760, %v107_v31  ;;  %v3572_v40 = vand.u32 4294901760, %v74_v37  ;;  %v3575_v41 = vsub.f32 %v104_v30, %v152_v35  ;;  %v110_v43 = vsel %vm72_vm0, %v36_v38, 0 }
   0xa   :  { %3121 = vmatpush3.bf16.xpose.msra.mxu0 %v3118_v22  ;;  %v3126_v34 = vpack.c.bf16 %v3553_v29, %v3551_v28  ;;  %v113_v45 = vsel %vm72_vm0, %v37_v39, 0  ;;  %v257_v48 = vand.u32 4294901760, %v3528_v17  ;;  %v264_v49 = vand.u32 4294901760, %v3530_v18 }
   0xb   :  { %3123 = vmatprep.subr.bf16.mxu0 %v3122_v25  ;;  %v3577_v42 = vsub.f32 %v107_v31, %v155_v36  ;;  %v3581_v44 = vsub.f32 %v74_v37, %v3572_v40  ;;  %v3584_v46 = vpack.c.bf16 %v155_v36, %v152_v35  ;;  %v158_v50 = vand.u32 4294901760, %v110_v43  ;;  %v42_v35 = vld [vmem:[%s4192_s0 + $0x70] sm:$0xff]  ;;  %v43_v36 = vld [vmem:[%s4192_s0 + $0x78] sm:$0xff] }
   0xc   :  { %v271_v51 = vand.u32 4294901760, %v3532_v19  ;;  %v278_v52 = vand.u32 4294901760, %v3536_v21  ;;  %v161_v54 = vand.u32 4294901760, %v113_v45  ;;  %v3601_v56 = vpack.c.bf16 %v264_v49, %v257_v48 }
   0xd   :  { %2700 = vmatprep.mubr.f32.mxu0 %v3581_v44  ;;  %v216_v47 = vand.u32 4294901760, %v3581_v44  ;;  %v3130_v53 = vpack.c.bf16 %v3577_v42, %v3575_v41  ;;  %v285_v61 = vand.u32 4294901760, %v3551_v28  ;;  %v292_v62 = vand.u32 4294901760, %v3553_v29 }
   0xe   :  { %v3608_v57 = vpack.c.bf16 %v278_v52, %v271_v51  ;;  %v3619_v63 = vsub.f32 %v110_v43, %v158_v50  ;;  %v3621_v0 = vsub.f32 %v113_v45, %v161_v54  ;;  %v299_v1 = vand.u32 4294901760, %v3575_v41 }
   0xf   :  { %v217_v55 = vsub.f32 %v3581_v44, %v216_v47  ;;  %v306_v2 = vand.u32 4294901760, %v3577_v42  ;;  %v116_v3 = vsel %vm72_vm0, %v38_v58, 0  ;;  %v119_v4 = vsel %vm72_vm0, %v39_v59, 0  ;;  %v45_v58 = vld [vmem:[%s4193_s1 + $0x8] sm:$0xff]  ;;  %v46_v59 = vld [vmem:[%s4193_s1 + $0x10] sm:$0xff] }
  0x10   :  { %3061 = vmatpush3.bf16.xpose.msra.mxu1 %v3534_v20  ;;  %v3631_v5 = vpack.c.bf16 %v292_v62, %v285_v61  ;;  %v3633_v6 = vpack.c.bf16 %v161_v54, %v158_v50  ;;  %v3134_v8 = vpack.c.bf16 %v3621_v0, %v3619_v63  ;;  %v164_v9 = vand.u32 4294901760, %v116_v3 }
  0x11   :  { %3063 = vmatprep.subr.bf16.mxu1 %v3560_v33  ;;  %v218_v60 = vand.u32 4294901760, %v217_v55  ;;  %v3639_v7 = vpack.c.bf16 %v306_v2, %v299_v1  ;;  %v167_v10 = vand.u32 4294901760, %v119_v4  ;;  %v313_v11 = vand.u32 4294901760, %v3619_v63 }
  0x12   :  { %3125 = vmatpush3.bf16.xpose.msra.mxu0 %v3122_v25  ;;  %v320_v12 = vand.u32 4294901760, %v3621_v0  ;;  %v3659_v22 = vsub.f32 %v116_v3, %v164_v9  ;;  %v122_v24 = vsel %vm72_vm0, %v40_v13, 0  ;;  %v125_v25 = vsel %vm72_vm0, %v41_v14, 0  ;;  %v47_v14 = vld [vmem:[%s4193_s1 + $0x18] sm:$0xff] }
  0x13   :  { %3127 = vmatprep.subr.bf16.mxu0 %v3126_v34  ;;  %2624 = vmatprep.mubr.f32.mxu1 %v218_v60  ;;  %v3661_v23 = vsub.f32 %v119_v4, %v167_v10  ;;  %v3665_v26 = vpack.c.bf16 %v167_v10, %v164_v9  ;;  %v170_v30 = vand.u32 4294901760, %v122_v24  ;;  %v173_v31 = vand.u32 4294901760, %v125_v25 }
  0x14   :  { %v3657_v15 = vpack.c.bf16 %v320_v12, %v313_v11  ;;  %v327_v32 = vand.u32 4294901760, %v3659_v22  ;;  %v128_v43 = vsel %vm72_vm0, %v42_v35, 0  ;;  %v131_v45 = vsel %vm72_vm0, %v43_v36, 0 }
  0x15   :  { %v3138_v27 = vpack.c.bf16 %v3661_v23, %v3659_v22  ;;  %v3685_v38 = vsub.f32 %v122_v24, %v170_v30  ;;  %v3687_v39 = vsub.f32 %v125_v25, %v173_v31  ;;  %v3691_v50 = vpack.c.bf16 %v173_v31, %v170_v30 }
  0x16   :  { %v176_v54 = vand.u32 4294901760, %v128_v43  ;;  %v179_v55 = vand.u32 4294901760, %v131_v45  ;;  %v77_v4 = vsel %vm72_vm0, %v45_v58, 0  ;;  %v80_v13 = vsel %vm72_vm0, %v46_v59, 0 }
  0x17   :  { %v341_v60 = vand.u32 4294901760, %v3685_v38  ;;  %v348_v3 = vand.u32 4294901760, %v3687_v39  ;;  %v3722_v25 = vand.u32 4294901760, %v77_v4  ;;  %v265_v30 = vsub.f32 %v3530_v18, %v264_v49 }
  0x18   :  { %3065 = vmatpush3.bf16.xpose.msra.mxu1 %v3560_v33  ;;  %v3712_v9 = vsub.f32 %v128_v43, %v176_v54  ;;  %v3714_v10 = vsub.f32 %v131_v45, %v179_v55  ;;  %v3720_v24 = vpack.c.bf16 %v179_v55, %v176_v54  ;;  %v3730_v31 = vand.u32 4294901760, %v80_v13 }
  0x19   :  { %3067 = vmatprep.subr.bf16.mxu1 %v3584_v46  ;;  %v83_v35 = vsel %vm72_vm0, %v47_v14, 0  ;;  %v3739_v54 = vsub.f32 %v77_v4, %v3722_v25 }
  0x1a   :  { %3129 = vmatpush3.bf16.xpose.msra.mxu0 %v3126_v34  ;;  %v334_v34 = vand.u32 4294901760, %v3661_v23  ;;  %v3146_v36 = vpack.c.bf16 %v3714_v10, %v3712_v9  ;;  %v355_v43 = vand.u32 4294901760, %v3712_v9  ;;  %v362_v45 = vand.u32 4294901760, %v3714_v10 }
  0x1b   :  { %3131 = vmatprep.subr.bf16.mxu0 %v3130_v53  ;;  %v3745_v49 = vsub.f32 %v80_v13, %v3730_v31  ;;  %v4200_v58 = vand.u32 4294901760, %v3739_v54  ;;  %v279_v13 = vsub.f32 %v3536_v21, %v278_v52 }
  0x1c   :  { %v3683_v37 = vpack.c.bf16 %v334_v34, %v327_v32  ;;  %v3751_v55 = vpack.c.bf16 %v362_v45, %v355_v43 }
  0x1d   :  { %v4201_v59 = vand.u32 4294901760, %v3745_v49 }
  0x20   :  { %3069 = vmatpush3.bf16.xpose.msra.mxu1 %v3584_v46 }
  0x21   :  { %3071 = vmatprep.subr.bf16.mxu1 %v3633_v6 }
  0x22   :  { %3133 = vmatpush3.bf16.xpose.msra.mxu0 %v3130_v53  ;;  %v3142_v53 = vpack.c.bf16 %v3687_v39, %v3685_v38 }
  0x23   :  { %3135 = vmatprep.subr.bf16.mxu0 %v3134_v8 }
  0x28   :  { %3073 = vmatpush3.bf16.xpose.msra.mxu1 %v3633_v6 }
  0x29   :  { %3075 = vmatprep.subr.bf16.mxu1 %v3665_v26 }
  0x2a   :  { %3137 = vmatpush3.bf16.xpose.msra.mxu0 %v3134_v8  ;;  %v3710_v8 = vpack.c.bf16 %v348_v3, %v341_v60 }
  0x2b   :  { %3139 = vmatprep.subr.bf16.mxu0 %v3138_v27 }
  0x30   :  { %3077 = vmatpush3.bf16.xpose.msra.mxu1 %v3665_v26 }
  0x31   :  { %3079 = vmatprep.subr.bf16.mxu1 %v3691_v50 }
  0x32   :  { %3141 = vmatpush3.bf16.xpose.msra.mxu0 %v3138_v27  ;;  %v258_v27 = vsub.f32 %v3528_v17, %v257_v48  ;;  %v3742_v17 = vand.u32 4294901760, %v83_v35  ;;  %v266_v48 = vand.u32 4294901760, %v265_v30 }
  0x33   :  { %3143 = vmatprep.subr.bf16.mxu0 %v3142_v53 }
  0x34   :  { %v259_v18 = vand.u32 4294901760, %v258_v27  ;;  %v3756_v4 = vsub.f32 %v83_v35, %v3742_v17  ;;  %v227_v27 = vsub.f32 %v3739_v54, %v4200_v58  ;;  %v237_v35 = vsub.f32 %v3745_v49, %v4201_v59 }
  0x35   :  { %v286_v58 = vsub.f32 %v3551_v28, %v285_v61  ;;  %v293_v59 = vsub.f32 %v3553_v29, %v292_v62  ;;  %v300_v29 = vsub.f32 %v3575_v41, %v299_v1  ;;  %v307_v61 = vsub.f32 %v3577_v42, %v306_v2 }
  0x36   :  { %v3086_v14 = vpack.c.bf16 %v266_v48, %v259_v18  ;;  %v246_v30 = vand.u32 4294901760, %v3756_v4  ;;  %v280_v48 = vand.u32 4294901760, %v279_v13  ;;  %v314_v41 = vsub.f32 %v3619_v63, %v313_v11 }
  0x37   :  { %v294_v13 = vand.u32 4294901760, %v293_v59  ;;  %v301_v62 = vand.u32 4294901760, %v300_v29  ;;  %v321_v42 = vsub.f32 %v3621_v0, %v320_v12  ;;  %v328_v2 = vsub.f32 %v3659_v22, %v327_v32 }
  0x38   :  { %3081 = vmatpush3.bf16.xpose.msra.mxu1 %v3691_v50  ;;  %v247_v21 = vsub.f32 %v3756_v4, %v246_v30  ;;  %v315_v44 = vand.u32 4294901760, %v314_v41  ;;  %v335_v63 = vsub.f32 %v3661_v23, %v334_v34  ;;  %v349_v22 = vsub.f32 %v3687_v39, %v348_v3 }
  0x39   :  { %3083 = vmatprep.subr.bf16.mxu1 %v3720_v24  ;;  %v329_v0 = vand.u32 4294901760, %v328_v2 }
  0x3a   :  { %3145 = vmatpush3.bf16.xpose.msra.mxu0 %v3142_v53  ;;  %v272_v53 = vsub.f32 %v3532_v19, %v271_v51  ;;  %v228_v19 = vand.u32 4294901760, %v227_v27  ;;  %v238_v51 = vand.u32 4294901760, %v237_v35  ;;  %v336_v11 = vand.u32 4294901760, %v335_v63  ;;  %v916_v35 = vld [vmem:[%s4196_s4 + $0x8] sm:$0xff] }
  0x3b   :  { %3147 = vmatprep.subr.bf16.mxu0 %v3146_v36  ;;  %v350_v32 = vand.u32 4294901760, %v349_v22  ;;  %v356_v27 = vsub.f32 %v3712_v9, %v355_v43  ;;  %v4202_v9 = vand.u32 4294901760, %v3739_v54  ;;  %v3458_v43 = vmov 0  }
  0x3c   :  { %v273_v18 = vand.u32 4294901760, %v272_v53  ;;  %v248_v53 = vand.u32 4294901760, %v247_v21  ;;  %v3106_v12 = vpack.c.bf16 %v336_v11, %v329_v0  ;;  %3452 = vset.pattern.permute.xlu0 %v3458_v43  ;;  %3453 = vset.pattern.permute.xlu1 %v3458_v43  ;;  %v921_v21 = vld [vmem:[%s4196_s4 + $0x30] sm:$0xff] }
  0x3d   :  { %v357_v39 = vand.u32 4294901760, %v356_v27 }
  0x3e   :  { %v3090_v52 = vpack.c.bf16 %v280_v48, %v273_v18  ;;  %v917_v18 = vld [vmem:[%s4196_s4 + $0x10] sm:$0xff]  ;;  %v919_v48 = vld [vmem:[%s4196_s4 + $0x20] sm:$0xff] }
  0x40   :  { %3085 = vmatpush3.bf16.xpose.msra.mxu1 %v3720_v24 }
  0x41   :  { %3087 = vmatprep.subr.bf16.mxu1 %v3086_v14 }
  0x42   :  { %3149 = vmatpush3.bf16.xpose.msra.mxu0 %v3146_v36  ;;  %v287_v36 = vand.u32 4294901760, %v286_v58  ;;  %v308_v58 = vand.u32 4294901760, %v307_v61  ;;  %v914_v61 = vld [vmem:[%s4197_s3 + $0x38] sm:$0xff] }
  0x43   :  { %3151 = vmatprep.subr.bf16.mxu0 %v3526_v16 }
  0x44   :  { %v3094_v28 = vpack.c.bf16 %v294_v13, %v287_v36  ;;  %v3098_v59 = vpack.c.bf16 %v308_v58, %v301_v62  ;;  %v3963_v62 = vsel %vm963_vm1, %v914_v61, 0 }
  0x47   :  { %2625 = vmatmul.mubr.f32.vlgmr.msra.gmra.mrb[0].mxu1 %v228_v19  ;;  %v920_v19 = vld [vmem:[%s4196_s4 + $0x28] sm:$0xff] }
  0x48   :  { %3089 = vmatpush3.bf16.xpose.msra.mxu1 %v3086_v14  ;;  %2627 = vmatprep.mubr.f32.mxu1 %v238_v51  ;;  %v342_v14 = vsub.f32 %v3685_v38, %v341_v60  ;;  %v363_v38 = vsub.f32 %v3714_v10, %v362_v45  ;;  %v4203_v10 = vand.u32 4294901760, %v3745_v49  ;;  %v48_v45 = vld [vmem:[%s4194_s2] sm:$0xff] }
  0x49   :  { %2701 = vmatmul.mubr.f32.vlgmr.msra.gmra.mrb[0].mxu0 %v3739_v54  ;;  %3091 = vmatprep.subr.bf16.mxu1 %v3090_v52  ;;  %v12_v54 = vstv %s4195_s6 }
  0x4a   :  { %3153 = vmatpush3.bf16.xpose.msra.mxu0 %v3526_v16  ;;  %2703 = vmatprep.mubr.f32.mxu0 %v3745_v49  ;;  %v343_v23 = vand.u32 4294901760, %v342_v14  ;;  %v364_v60 = vand.u32 4294901760, %v363_v38  ;;  %13 = vst [vmem:[#allocation2] sm:$0x1] %v12_v54  ;;  %v49_v49 = vld [vmem:[%s4194_s2 + $0x8] sm:$0xff] }
  0x4b   :  { %3155 = vmatprep.subr.bf16.mxu0 %v3534_v20  ;;  %2628 = vmatmul.mubr.f32.gmra.mrb[2].mxu1 %v248_v53  ;;  %v912_v53 = vld [vmem:[%s4197_s3 + $0x28] sm:$0xff] }
  0x4c   :  { %2662 = vmatprep.mubr.f32.mxu1 %v3572_v40  ;;  %v3110_v34 = vpack.c.bf16 %v350_v32, %v343_v23  ;;  %v3114_v3 = vpack.c.bf16 %v364_v60, %v357_v39  ;;  %54 = vperm.xlu0 %3452, %v48_v45   ;;  %v980_v13 = vsel %vm963_vm1, %v912_v53, 0 }
  0x4d   :  { %2704 = vmatmul.mubr.f32.gmra.mrb[2].mxu0 %v3756_v4  ;;  %v51_v4 = vld [vmem:[%s4194_s2 + $0x18] sm:$0xff] }
  0x4e   :  { %2738 = vmatprep.mubr.f32.mxu0 %v216_v47  ;;  %v322_v47 = vand.u32 4294901760, %v321_v42 }
  0x50   :  { %3093 = vmatpush3.bf16.xpose.msra.mxu1 %v3090_v52  ;;  %v3102_v1 = vpack.c.bf16 %v322_v47, %v315_v44  ;;  %59 = vperm.xlu0 %3452, %v49_v49   ;;  %v3987_v49 = vand.u32 4294901760, %v980_v13 }
  0x51   :  { %3095 = vmatprep.subr.bf16.mxu1 %v3094_v28  ;;  %v1783_v51 = vld [vmem:[#allocation2] sm:$0x1] }
  0x52   :  { %3157 = vmatpush3.bf16.xpose.msra.mxu0 %v3534_v20 }
  0x53   :  { %3159 = vmatprep.subr.bf16.mxu0 %v3560_v33 }
  0x58   :  { %3097 = vmatpush3.bf16.xpose.msra.mxu1 %v3094_v28  ;;  %v913_v28 = vld [vmem:[%s4197_s3 + $0x30] sm:$0xff] }
  0x59   :  { %3099 = vmatprep.subr.bf16.mxu1 %v3098_v59  ;;  %v983_v29 = vsel %vm963_vm1, %v913_v28, 0 }
  0x5a   :  { %3161 = vmatpush3.bf16.xpose.msra.mxu0 %v3560_v33 }
  0x5b   :  { %3163 = vmatprep.subr.bf16.mxu0 %v3584_v46 }
  0x60   :  { %3101 = vmatpush3.bf16.xpose.msra.mxu1 %v3098_v59 }
  0x61   :  { %3103 = vmatprep.subr.bf16.mxu1 %v3102_v1 }
  0x62   :  { %3165 = vmatpush3.bf16.xpose.msra.mxu0 %v3584_v46 }
  0x63   :  { %3167 = vmatprep.subr.bf16.mxu0 %v3633_v6 }
  0x68   :  { %3105 = vmatpush3.bf16.xpose.msra.mxu1 %v3102_v1 }
  0x69   :  { %3107 = vmatprep.subr.bf16.mxu1 %v3106_v12 }
  0x6a   :  { %3169 = vmatpush3.bf16.xpose.msra.mxu0 %v3633_v6 }
  0x6b   :  { %3171 = vmatprep.subr.bf16.mxu0 %v3665_v26 }
  0x70   :  { %3109 = vmatpush3.bf16.xpose.msra.mxu1 %v3106_v12 }
  0x71   :  { %3111 = vmatprep.subr.bf16.mxu1 %v3110_v34 }
  0x72   :  { %3173 = vmatpush3.bf16.xpose.msra.mxu0 %v3665_v26 }
  0x73   :  { %3175 = vmatprep.subr.bf16.mxu0 %v3691_v50 }
  0x78   :  { %3113 = vmatpush3.bf16.xpose.msra.mxu1 %v3110_v34 }
  0x79   :  { %3115 = vmatprep.subr.bf16.mxu1 %v3114_v3 }
  0x7a   :  { %3177 = vmatpush3.bf16.xpose.msra.mxu0 %v3691_v50 }
  0x7b   :  { %3179 = vmatprep.subr.bf16.mxu0 %v3720_v24 }
  0x80   :  { %3117 = vmatpush3.bf16.xpose.msra.mxu1 %v3114_v3 }
  0x82   :  { %3181 = vmatpush3.bf16.xpose.msra.mxu0 %v3720_v24 }
  0x83   :  { %3183 = vmatprep.subr.bf16.mxu0 %v3601_v56 }
  0x87   :  { %2663 = vmatmul.mubr.f32.vlgmr.msra.gmra.mrb[0].mxu1 %v3722_v25 }
  0x88   :  { %2665 = vmatprep.mubr.f32.mxu1 %v3730_v31 }
  0x89   :  { %2739 = vmatmul.mubr.f32.vlgmr.msra.gmra.mrb[0].mxu0 %v4202_v9 }
  0x8a   :  { %3185 = vmatpush3.bf16.xpose.msra.mxu0 %v3601_v56  ;;  %2741 = vmatprep.mubr.f32.mxu0 %v4203_v10  ;;  %v50_v56 = vld [vmem:[%s4194_s2 + $0x10] sm:$0xff] }
  0x8b   :  { %3187 = vmatprep.subr.bf16.mxu0 %v3608_v57  ;;  %2666 = vmatmul.mubr.f32.gmra.mrb[2].mxu1 %v3742_v17 }
  0x8c   :  { %64 = vperm.xlu1 %3453, %v50_v56  }
  0x8d   :  { %2742 = vmatmul.mubr.f32.gmra.mrb[2].mxu0 %v246_v30  ;;  %v915_v30 = vld [vmem:[%s4196_s4] sm:$0xff] }
  0x8e   :  { %2776 = vmatprep.mubr.f32.mxu0 %v3572_v40  ;;  %925 = vperm.xlu0 %3452, %v915_v30  }
  0x90   :  { %69 = vperm.xlu1 %3453, %v51_v4  }
  0x92   :  { %3189 = vmatpush3.bf16.xpose.msra.mxu0 %v3608_v57  ;;  %v918_v57 = vld [vmem:[%s4196_s4 + $0x18] sm:$0xff]  ;;  %935 = vperm.xlu0 %3452, %v917_v18  }
  0x93   :  { %3191 = vmatprep.subr.bf16.mxu0 %v3631_v5 }
  0x94   :  { %930 = vperm.xlu1 %3453, %v916_v35  }
  0x96   :  { %945 = vperm.xlu0 %3452, %v919_v48  }
  0x98   :  { %940 = vperm.xlu1 %3453, %v918_v57  }
  0x9a   :  { %3193 = vmatpush3.bf16.xpose.msra.mxu0 %v3631_v5  ;;  %v922_v5 = vld [vmem:[%s4196_s4 + $0x38] sm:$0xff]  ;;  %955 = vperm.xlu0 %3452, %v921_v21  }
  0x9b   :  { %3195 = vmatprep.subr.bf16.mxu0 %v3639_v7 }
  0x9c   :  { %950 = vperm.xlu1 %3453, %v920_v19   ;;  %v3992_v19 = vand.u32 4294901760, %v983_v29 }
  0x9e   :  { %1786 = vperm.xlu0 %3452, %v1783_v51  }
  0xa0   :  { %960 = vperm.xlu1 %3453, %v922_v5  }
  0xa2   :  { %3197 = vmatpush3.bf16.xpose.msra.mxu0 %v3639_v7  ;;  %v908_v7 = vld [vmem:[%s4197_s3 + $0x8] sm:$0xff] }
  0xa3   :  { %3199 = vmatprep.subr.bf16.mxu0 %v3657_v15 }
  0xaa   :  { %3201 = vmatpush3.bf16.xpose.msra.mxu0 %v3657_v15 }
  0xab   :  { %3203 = vmatprep.subr.bf16.mxu0 %v3683_v37 }
  0xb2   :  { %3205 = vmatpush3.bf16.xpose.msra.mxu0 %v3683_v37 }
  0xb3   :  { %3207 = vmatprep.subr.bf16.mxu0 %v3710_v8 }
  0xba   :  { %3209 = vmatpush3.bf16.xpose.msra.mxu0 %v3710_v8 }
  0xbb   :  { %3211 = vmatprep.subr.bf16.mxu0 %v3751_v55 }
  0xc2   :  { %3213 = vmatpush3.bf16.xpose.msra.mxu0 %v3751_v55  ;;  %v911_v55 = vld [vmem:[%s4197_s3 + $0x20] sm:$0xff] }
  0xc3   :  { %3215 = vmatprep.subr.bf16.mxu0 %v3526_v16  ;;  %v977_v52 = vsel %vm963_vm1, %v911_v55, 0 }
  0xc4   :  { %v3981_v39 = vand.u32 4294901760, %v977_v52 }
  0xc6   :  { %v3990_v48 = vsub.f32 %v977_v52, %v3981_v39 }
  0xc9   :  { %2777 = vmatmul.mubr.f32.vlgmr.msra.gmra.mrb[0].mxu0 %v3722_v25 }
  0xca   :  { %3217 = vmatpush3.bf16.xpose.msra.mxu0 %v3526_v16  ;;  %2779 = vmatprep.mubr.f32.mxu0 %v3730_v31 }
  0xcb   :  { %3219 = vmatprep.subr.bf16.mxu0 %v3534_v20  ;;  %v55_v58 = vpop.permute.xlu0 %54 }
  0xcd   :  { %2780 = vmatmul.mubr.f32.gmra.mrb[2].mxu0 %v3742_v17 }
  0xce   :  { %2814 = vmatprep.mubr.f32.mxu0 %v3572_v40 }
  0xcf   :  { %v60_v42 = vpop.permute.xlu0 %59 }
  0xd2   :  { %3221 = vmatpush3.bf16.xpose.msra.mxu0 %v3534_v20 }
  0xd3   :  { %3223 = vmatprep.subr.bf16.mxu0 %v3560_v33 }
  0xda   :  { %3225 = vmatpush3.bf16.xpose.msra.mxu0 %v3560_v33 }
  0xdb   :  { %3227 = vmatprep.subr.bf16.mxu0 %v3584_v46 }
  0xe2   :  { %3229 = vmatpush3.bf16.xpose.msra.mxu0 %v3584_v46  ;;  %v907_v46 = vld [vmem:[%s4197_s3] sm:$0xff] }
  0xe3   :  { %3231 = vmatprep.subr.bf16.mxu0 %v3633_v6 }
  0xea   :  { %3233 = vmatpush3.bf16.xpose.msra.mxu0 %v3633_v6  ;;  %v965_v6 = vsel %vm963_vm1, %v907_v46, 0  ;;  %v4001_v46 = vsub.f32 %v980_v13, %v3987_v49 }
  0xeb   :  { %3235 = vmatprep.subr.bf16.mxu0 %v3665_v26  ;;  %v3928_v15 = vand.u32 4294901760, %v965_v6 }
  0xed   :  { %v3932_v37 = vsub.f32 %v965_v6, %v3928_v15  ;;  %2848 = vmatprep.mubr.f32.mxu1 %v3928_v15 }
  0xf2   :  { %3237 = vmatpush3.bf16.xpose.msra.mxu0 %v3665_v26  ;;  %v968_v26 = vsel %vm963_vm1, %v908_v7, 0 }
  0xf3   :  { %3239 = vmatprep.subr.bf16.mxu0 %v3691_v50  ;;  %v3965_v59 = vand.u32 4294901760, %v968_v26 }
  0xf5   :  { %v3968_v41 = vsub.f32 %v968_v26, %v3965_v59 }
  0xf7   :  { %v1069_v1 = vand.u32 4294901760, %v3968_v41 }
  0xf9   :  { %v1070_v34 = vsub.f32 %v3968_v41, %v1069_v1 }
  0xfa   :  { %3241 = vmatpush3.bf16.xpose.msra.mxu0 %v3691_v50  ;;  %v909_v50 = vld [vmem:[%s4197_s3 + $0x10] sm:$0xff] }
  0xfb   :  { %3243 = vmatprep.subr.bf16.mxu0 %v3720_v24  ;;  %v971_v8 = vsel %vm963_vm1, %v909_v50, 0  ;;  %v1071_v35 = vand.u32 4294901760, %v1070_v34  ;;  %v4005_v50 = vand.u32 4294901760, %v3963_v62 }
  0xfc   :  { %v3970_v47 = vand.u32 4294901760, %v971_v8 }
  0xfe   :  { %v3976_v22 = vsub.f32 %v971_v8, %v3970_v47 }
 0x100   :  { %v1079_v54 = vand.u32 4294901760, %v3976_v22 }
 0x102   :  { %3245 = vmatpush3.bf16.xpose.msra.mxu0 %v3720_v24  ;;  %v910_v24 = vld [vmem:[%s4197_s3 + $0x18] sm:$0xff] }
 0x109   :  { %2815 = vmatmul.mubr.f32.vlgmr.msra.gmra.mrb[0].mxu0 %v3722_v25  ;;  %v1059_v25 = vand.u32 4294901760, %v3932_v37 }
 0x10a   :  { %2817 = vmatprep.mubr.f32.mxu0 %v3730_v31  ;;  %v974_v31 = vsel %vm963_vm1, %v910_v24, 0 }
 0x10b   :  { %v65_v44 = vpop.permute.xlu1 %64  ;;  %v3973_v11 = vand.u32 4294901760, %v974_v31 }
 0x10d   :  { %2818 = vmatmul.mubr.f32.gmra.mrb[2].mxu0 %v3742_v17  ;;  %v1060_v17 = vsub.f32 %v3932_v37, %v1059_v25  ;;  %v3984_v10 = vsub.f32 %v974_v31, %v3973_v11  ;;  %v1099_v31 = vand.u32 4294901760, %v3990_v48 }
 0x10f   :  { %v1061_v36 = vand.u32 4294901760, %v1060_v17  ;;  %v70_v23 = vpop.permute.xlu1 %69  ;;  %v4010_v17 = vsub.f32 %v983_v29, %v3992_v19 }
 0x111   :  { %2828 = vmatprep.mubr.f32.mxu0 %v1061_v36 }
 0x15a   :  { %v2664_v16 = vpop.f32.mrb[0].mxu1 }
 0x15b   :  { %v401_v20 = vpop.f32.mrb[1].mxu1  ;;  %v3366_v2 = vadd.f32 %v2664_v16, %v60_v42  ;;  %v1089_v16 = vand.u32 4294901760, %v3984_v10 }
 0x15c   :  { %v3368_v63 = vadd.f32 %v401_v20, %v55_v58  ;;  %v1109_v58 = vand.u32 4294901760, %v4001_v46 }
 0x15d   :  { %v1090_v61 = vsub.f32 %v3984_v10, %v1089_v16 }
 0x15e   :  { %v2667_v33 = vpop.f32.mrb[2].mxu1 }
 0x15f   :  { %v413_v40 = vpop.f32.mrb[3].mxu1  ;;  %v3370_v27 = vadd.f32 %v2667_v33, %v70_v23 }
 0x160   :  { %v3372_v60 = vadd.f32 %v413_v40, %v65_v44  ;;  %v1080_v40 = vsub.f32 %v3976_v22, %v1079_v54 }
 0x1dc   :  { %v2816_v0 = vpop.f32.mrb[0].mxu0 }
 0x1dd   :  { %v3367_v12 = vadd.f32 %v3366_v2, %v2816_v0  ;;  %v881_v14 = vpop.f32.mrb[1].mxu0  ;;  %v4023_v2 = vsub.f32 %v3963_v62, %v4005_v50  ;;  %v1110_v62 = vsub.f32 %v4001_v46, %v1109_v58 }
 0x1de   :  { %v3369_v32 = vadd.f32 %v3368_v63, %v881_v14  ;;  %v1081_v63 = vand.u32 4294901760, %v1080_v40  ;;  %v1119_v14 = vand.u32 4294901760, %v4010_v17 }
 0x1df   :  { %v904_v38 = vmax.f32 %v3367_v12, 0.0  ;;  %v1100_v12 = vsub.f32 %v3990_v48, %v1099_v31 }
 0x1e0   :  { %v903_v3 = vmax.f32 %v3369_v32, 0.0  ;;  %v2819_v9 = vpop.f32.mrb[2].mxu0 }
 0x1e1   :  { %v992_v43 = vand.u32 4294901760, %v904_v38  ;;  %v3371_v45 = vadd.f32 %v3370_v27, %v2819_v9  ;;  %v893_v56 = vpop.f32.mrb[3].mxu0  ;;  %v1101_v9 = vand.u32 4294901760, %v1100_v12 }
 0x1e2   :  { %v989_v4 = vand.u32 4294901760, %v903_v3  ;;  %v3373_v30 = vadd.f32 %v3372_v60, %v893_v56  ;;  %v1111_v56 = vand.u32 4294901760, %v1110_v62 }
 0x1e3   :  { %v1146_v18 = vsub.f32 %v904_v38, %v992_v43  ;;  %v906_v57 = vmax.f32 %v3371_v45, 0.0  ;;  %v1091_v38 = vand.u32 4294901760, %v1090_v61 }
 0x1e4   :  { %v3994_v21 = vpack.c.bf16 %v992_v43, %v989_v4  ;;  %v1139_v5 = vsub.f32 %v903_v3, %v989_v4  ;;  %v905_v51 = vmax.f32 %v3373_v30, 0.0  ;;  %v1129_v3 = vand.u32 4294901760, %v4023_v2 }
 0x1e5   :  { %v1147_v20 = vand.u32 4294901760, %v1146_v18  ;;  %v998_v33 = vand.u32 4294901760, %v906_v57  ;;  %v1120_v43 = vsub.f32 %v4010_v17, %v1119_v14 }
 0x1e6   :  { %v1140_v6 = vand.u32 4294901760, %v1139_v5  ;;  %v995_v7 = vand.u32 4294901760, %v905_v51  ;;  %3247 = vmatprep.subr.bf16.mxu0 %v3994_v21  ;;  %v3262_v26 = vpack.c.bf16 %v1146_v18, %v1139_v5  ;;  %v1130_v4 = vsub.f32 %v4023_v2, %v1129_v3 }
 0x1e7   :  { %v1160_v8 = vsub.f32 %v906_v57, %v998_v33  ;;  %3249 = vmatpush3.bf16.msra.mxu0 %v3994_v21  ;;  %v1148_v24 = vsub.f32 %v1146_v18, %v1147_v20  ;;  %v1121_v30 = vand.u32 4294901760, %v1120_v43 }
 0x1e8   :  { %v4012_v55 = vpack.c.bf16 %v998_v33, %v995_v7  ;;  %v1153_v52 = vsub.f32 %v905_v51, %v995_v7  ;;  %v1141_v53 = vsub.f32 %v1139_v5, %v1140_v6  ;;  %v4014_v36 = vpack.c.bf16 %v1147_v20, %v1140_v6 }
 0x1e9   :  { %v1161_v13 = vand.u32 4294901760, %v1160_v8  ;;  %v1149_v28 = vand.u32 4294901760, %v1148_v24 }
 0x1ea   :  { %v1154_v42 = vand.u32 4294901760, %v1153_v52  ;;  %3251 = vmatprep.subr.bf16.mxu0 %v4012_v55  ;;  %v1142_v44 = vand.u32 4294901760, %v1141_v53  ;;  %v3266_v29 = vpack.c.bf16 %v1160_v8, %v1153_v52 }
 0x1eb   :  { %3253 = vmatpush3.bf16.msra.mxu0 %v4012_v55  ;;  %v1162_v0 = vsub.f32 %v1160_v8, %v1161_v13 }
 0x1ec   :  { %v3254_v23 = vpack.c.bf16 %v1149_v28, %v1142_v44  ;;  %v1155_v32 = vsub.f32 %v1153_v52, %v1154_v42  ;;  %v3282_v34 = vpack.c.bf16 %v1161_v13, %v1154_v42 }
 0x1ed   :  { %v1163_v27 = vand.u32 4294901760, %v1162_v0 }
 0x1ee   :  { %2829 = vmatmul.mubr.f32.vlgmr.msra.gmra.mrb[4].mxu0 %v1071_v35  ;;  %3255 = vmatprep.subr.bf16.mxu1 %v3254_v23  ;;  %v1156_v60 = vand.u32 4294901760, %v1155_v32  ;;  %v1131_v35 = vand.u32 4294901760, %v1130_v4 }
 0x1ef   :  { %3257 = vmatpush3.bf16.msra.mxu1 %v3254_v23  ;;  %2831 = vmatprep.mubr.f32.mxu0 %v1081_v63 }
 0x1f0   :  { %v3258_v45 = vpack.c.bf16 %v1163_v27, %v1156_v60 }
 0x1f2   :  { %2832 = vmatmul.mubr.f32.gmra.mrb[6].mxu0 %v1091_v38  ;;  %3259 = vmatprep.subr.bf16.mxu1 %v3258_v45 }
 0x1f3   :  { %3261 = vmatpush3.bf16.msra.mxu1 %v3258_v45  ;;  %2834 = vmatprep.mubr.f32.mxu0 %v1101_v9 }
 0x1f4   :  { %3263 = vmatprep.subr.bf16.mxu1 %v3262_v26 }
 0x1f6   :  { %2835 = vmatmul.mubr.f32.gmra.mrb[8].mxu0 %v1111_v56  ;;  %2849 = vmatmul.mubr.f32.vlgmr.msra.gmra.mrb[4].mxu1 %v3965_v59 }
 0x1f7   :  { %3265 = vmatpush3.bf16.msra.mxu1 %v3262_v26  ;;  %2837 = vmatprep.mubr.f32.mxu0 %v1121_v30 }
 0x1f8   :  { %3267 = vmatprep.subr.bf16.mxu1 %v3266_v29  ;;  %2851 = vmatprep.mubr.f32.mxu1 %v3970_v47 }
 0x1fa   :  { %2838 = vmatmul.mubr.f32.gmra.mrb[10].mxu0 %v1131_v35  ;;  %2852 = vmatmul.mubr.f32.gmra.mrb[6].mxu1 %v3973_v11 }
 0x1fb   :  { %3269 = vmatpush3.bf16.msra.mxu1 %v3266_v29  ;;  %2854 = vmatprep.mubr.f32.mxu1 %v3981_v39 }
 0x1fc   :  { %3271 = vmatprep.subr.bf16.mxu1 %v3994_v21 }
 0x1fe   :  { %2855 = vmatmul.mubr.f32.gmra.mrb[8].mxu1 %v3987_v49 }
 0x1ff   :  { %2857 = vmatprep.mubr.f32.mxu1 %v3992_v19 }
 0x202   :  { %2858 = vmatmul.mubr.f32.gmra.mrb[10].mxu1 %v4005_v50 }
 0x203   :  { %2868 = vmatprep.mubr.f32.mxu1 %v3932_v37  ;;  %v3459_v37 = vmov 0.0|0.0  }
 0x204   :  { %3294 = vmatprep.subr.bf16.mxu0 %v3459_v37 }
 0x206   :  { %2869 = vmatmul.mubr.f32.vlgmr.msra.gmra.mrb[4].mxu1 %v3968_v41 }
 0x207   :  { %3273 = vmatpush3.bf16.msra.mxu1 %v3994_v21  ;;  %2871 = vmatprep.mubr.f32.mxu1 %v3976_v22 }
 0x208   :  { %3275 = vmatprep.subr.bf16.mxu1 %v4012_v55 }
 0x20a   :  { %2872 = vmatmul.mubr.f32.gmra.mrb[6].mxu1 %v3984_v10  ;;  %v1782_v10 = vld [vmem:[%s4198_s5] sm:$0x1] }
 0x20b   :  { %3277 = vmatpush3.bf16.msra.mxu1 %v4012_v55  ;;  %2874 = vmatprep.mubr.f32.mxu1 %v3990_v48  ;;  %v1795_v18 = vsel %vm1793_vm3, %v1782_v10, 0 }
 0x20c   :  { %3279 = vmatprep.subr.bf16.mxu1 %v4014_v36  ;;  %v4098_v57 = vand.u32 4294901760, %v1795_v18 }
 0x20e   :  { %2875 = vmatmul.mubr.f32.gmra.mrb[8].mxu1 %v4001_v46  ;;  %v4101_v5 = vsub.f32 %v1795_v18, %v4098_v57 }
 0x20f   :  { %2877 = vmatprep.mubr.f32.mxu1 %v4010_v17 }
 0x210   :  { %v1872_v26 = vand.u32 4294901760, %v4101_v5 }
 0x212   :  { %2878 = vmatmul.mubr.f32.gmra.mrb[10].mxu1 %v4023_v2 }
 0x213   :  { %2888 = vmatprep.mubr.f32.mxu1 %v1059_v25 }
 0x216   :  { %2889 = vmatmul.mubr.f32.vlgmr.msra.gmra.mrb[4].mxu1 %v1069_v1 }
 0x217   :  { %3281 = vmatpush3.bf16.msra.mxu1 %v4014_v36  ;;  %2891 = vmatprep.mubr.f32.mxu1 %v1079_v54  ;;  %v931_v54 = vpop.permute.xlu1 %930 }
 0x218   :  { %3283 = vmatprep.subr.bf16.mxu1 %v3282_v34 }
 0x21a   :  { %2892 = vmatmul.mubr.f32.gmra.mrb[6].mxu1 %v1089_v16 }
 0x21b   :  { %3285 = vmatpush3.bf16.msra.mxu1 %v3282_v34  ;;  %2894 = vmatprep.mubr.f32.mxu1 %v1099_v31  ;;  %v941_v48 = vpop.permute.xlu1 %940 }
 0x21c   :  { %3287 = vmatprep.subr.bf16.mxu1 %v3994_v21 }
 0x21e   :  { %2895 = vmatmul.mubr.f32.gmra.mrb[8].mxu1 %v1109_v58  ;;  %v4109_v58 = vsub.f32 %v4101_v5, %v1872_v26 }
 0x21f   :  { %2897 = vmatprep.mubr.f32.mxu1 %v1119_v14  ;;  %v951_v40 = vpop.permute.xlu1 %950 }
 0x222   :  { %2898 = vmatmul.mubr.f32.gmra.mrb[10].mxu1 %v1129_v3 }
 0x223   :  { %2908 = vmatprep.mubr.f32.mxu1 %v3928_v15  ;;  %v961_v42 = vpop.permute.xlu1 %960 }
 0x226   :  { %2909 = vmatmul.mubr.f32.vlgmr.msra.gmra.mrb[4].mxu1 %v3965_v59 }
 0x227   :  { %3289 = vmatpush3.bf16.msra.mxu1 %v3994_v21  ;;  %2911 = vmatprep.mubr.f32.mxu1 %v3970_v47 }
 0x228   :  { %3291 = vmatprep.subr.bf16.mxu1 %v4012_v55 }
 0x22a   :  { %2912 = vmatmul.mubr.f32.gmra.mrb[6].mxu1 %v3973_v11 }
 0x22b   :  { %3293 = vmatpush3.bf16.msra.mxu1 %v4012_v55  ;;  %2914 = vmatprep.mubr.f32.mxu1 %v3981_v39 }
 0x22c   :  { %3306 = vmatprep.subr.bf16.mxu1 %v3459_v37 }
 0x22e   :  { %2915 = vmatmul.mubr.f32.gmra.mrb[8].mxu1 %v3987_v49 }
 0x22f   :  { %2917 = vmatprep.mubr.f32.mxu1 %v3992_v19 }
 0x232   :  { %2918 = vmatmul.mubr.f32.gmra.mrb[10].mxu1 %v4005_v50 }
 0x233   :  { %2928 = vmatprep.mubr.f32.mxu1 %v3928_v15  ;;  %v3461_v15 = vmov 0.0  }
 0x234   :  { %2956 = vmatprep.mubr.msk.f32.mxu0 %vm3460_vm2, %v3461_v15 }
 0x236   :  { %2929 = vmatmul.mubr.f32.vlgmr.msra.gmra.mrb[4].mxu1 %v3965_v59 }
 0x237   :  { %2931 = vmatprep.mubr.f32.mxu1 %v3970_v47 }
 0x23a   :  { %2932 = vmatmul.mubr.f32.gmra.mrb[6].mxu1 %v3973_v11 }
 0x23b   :  { %2934 = vmatprep.mubr.f32.mxu1 %v3981_v39 }
 0x23e   :  { %2935 = vmatmul.mubr.f32.gmra.mrb[8].mxu1 %v3987_v49  ;;  %v926_v49 = vpop.permute.xlu0 %925 }
 0x23f   :  { %2937 = vmatprep.mubr.f32.mxu1 %v3992_v19 }
 0x242   :  { %2938 = vmatmul.mubr.f32.gmra.mrb[10].mxu1 %v4005_v50  ;;  %v936_v19 = vpop.permute.xlu0 %935 }
 0x243   :  { %2975 = vmatprep.mubr.msk.f32.mxu1 %vm3460_vm2, %v3461_v15 }
 0x246   :  { %v946_v50 = vpop.permute.xlu0 %945 }
 0x24a   :  { %v956_v27 = vpop.permute.xlu0 %955 }
 0x2c1   :  { %v2830_v25 = vpop.f32.mrb[4].mxu0 }
 0x2c2   :  { %v1063_v59 = vpop.f32.mrb[5].mxu0  ;;  %v1074_v21 = vadd.f32 %v2830_v25, %v931_v54 }
 0x2c3   :  { %v1064_v51 = vadd.f32 %v1063_v59, %v926_v49 }
 0x2c5   :  { %v2833_v41 = vpop.f32.mrb[6].mxu0 }
 0x2c6   :  { %v1083_v47 = vpop.f32.mrb[7].mxu0  ;;  %v1094_v6 = vadd.f32 %v2833_v41, %v941_v48 }
 0x2c7   :  { %v1084_v8 = vadd.f32 %v1083_v47, %v936_v19 }
 0x2c9   :  { %v2836_v1 = vpop.f32.mrb[8].mxu0 }
 0x2ca   :  { %v1103_v11 = vpop.f32.mrb[9].mxu0  ;;  %v1114_v13 = vadd.f32 %v2836_v1, %v951_v40 }
 0x2cb   :  { %v1104_v44 = vadd.f32 %v1103_v11, %v946_v50 }
 0x2cd   :  { %v2839_v22 = vpop.f32.mrb[10].mxu0 }
 0x2ce   :  { %v1123_v39 = vpop.f32.mrb[11].mxu0  ;;  %v1134_v12 = vadd.f32 %v2839_v22, %v961_v42 }
 0x2cf   :  { %v1124_v9 = vadd.f32 %v1123_v39, %v956_v27 }
 0x309   :  { %v2930_v16 = vpop.f32.mrb[4].mxu1 }
 0x30a   :  { %v3375_v20 = vadd.f32 %v2930_v16, %v1074_v21  ;;  %v1728_v33 = vpop.f32.mrb[5].mxu1 }
 0x30b   :  { %v3377_v46 = vadd.f32 %v1728_v33, %v1064_v51 }
 0x30c   :  { %v1775_v7 = vmax.f32 %v3375_v20, 0.0 }
 0x30d   :  { %v1774_v24 = vmax.f32 %v3377_v46, 0.0  ;;  %v2933_v31 = vpop.f32.mrb[6].mxu1 }
 0x30e   :  { %v1801_v17 = vand.u32 4294901760, %v1775_v7  ;;  %v3379_v55 = vadd.f32 %v2933_v31, %v1094_v6  ;;  %v1740_v52 = vpop.f32.mrb[7].mxu1 }
 0x30f   :  { %v1798_v53 = vand.u32 4294901760, %v1774_v24  ;;  %v3381_v36 = vadd.f32 %v1740_v52, %v1084_v8  ;;  %v1874_v52 = vand.u32 4294901760, %v4109_v58 }
 0x310   :  { %v4104_v28 = vsub.f32 %v1775_v7, %v1801_v17  ;;  %v1777_v61 = vmax.f32 %v3379_v55, 0.0 }
 0x311   :  { %v4111_v29 = vpack.c.bf16 %v1801_v17, %v1798_v53  ;;  %v4113_v2 = vsub.f32 %v1774_v24, %v1798_v53  ;;  %v1776_v63 = vmax.f32 %v3381_v36, 0.0  ;;  %v2936_v0 = vpop.f32.mrb[8].mxu1 }
 0x312   :  { %v1890_v14 = vand.u32 4294901760, %v4104_v28  ;;  %v1807_v23 = vand.u32 4294901760, %v1777_v61  ;;  %v3383_v32 = vadd.f32 %v2936_v0, %v1114_v13  ;;  %v1752_v34 = vpop.f32.mrb[9].mxu1 }
 0x313   :  { %v1883_v38 = vand.u32 4294901760, %v4113_v2  ;;  %v1804_v60 = vand.u32 4294901760, %v1776_v63  ;;  %v3385_v62 = vadd.f32 %v1752_v34, %v1104_v44  ;;  %3296 = vmatpush3.bf16.msra.mxu0 %v4111_v29  ;;  %v3319_v3 = vpack.c.bf16 %v4104_v28, %v4113_v2 }
 0x314   :  { %v1891_v43 = vsub.f32 %v4104_v28, %v1890_v14  ;;  %v4121_v45 = vsub.f32 %v1777_v61, %v1807_v23  ;;  %v1779_v56 = vmax.f32 %v3383_v32, 0.0  ;;  %3297 = vmatprep.subr.bf16.mxu0 %v3459_v37  ;;  %v1789_v28 = vlaneseq }
 0x315   :  { %v1884_v4 = vsub.f32 %v4113_v2, %v1883_v38  ;;  %v4125_v30 = vpack.c.bf16 %v1807_v23, %v1804_v60  ;;  %v4127_v35 = vsub.f32 %v1776_v63, %v1804_v60  ;;  %v1778_v25 = vmax.f32 %v3385_v62, 0.0  ;;  %v2939_v59 = vpop.f32.mrb[10].mxu1 }
 0x316   :  { %v1892_v41 = vand.u32 4294901760, %v1891_v43  ;;  %v1904_v47 = vand.u32 4294901760, %v4121_v45  ;;  %v1813_v1 = vand.u32 4294901760, %v1779_v56  ;;  %v3387_v11 = vadd.f32 %v2939_v59, %v1134_v12  ;;  %v1764_v22 = vpop.f32.mrb[11].mxu1 }
 0x317   :  { %v1885_v39 = vand.u32 4294901760, %v1884_v4  ;;  %v1897_v10 = vand.u32 4294901760, %v4127_v35  ;;  %v1810_v54 = vand.u32 4294901760, %v1778_v25  ;;  %v3389_v49 = vadd.f32 %v1764_v22, %v1124_v9  ;;  %3299 = vmatpush3.bf16.msra.mxu0 %v4125_v30 }
 0x318   :  { %v1905_v18 = vsub.f32 %v4121_v45, %v1904_v47  ;;  %v1917_v48 = vsub.f32 %v1779_v56, %v1813_v1  ;;  %v1781_v19 = vmax.f32 %v3387_v11, 0.0  ;;  %3300 = vmatprep.subr.bf16.mxu0 %v3459_v37  ;;  %v3322_v21 = vpack.c.bf16 %v4121_v45, %v4127_v35 }
 0x319   :  { %v1898_v51 = vsub.f32 %v4127_v35, %v1897_v10  ;;  %v4137_v16 = vpack.c.bf16 %v1813_v1, %v1810_v54  ;;  %v1910_v20 = vsub.f32 %v1778_v25, %v1810_v54  ;;  %v1780_v33 = vmax.f32 %v3389_v49, 0.0 }
 0x31a   :  { %v1906_v40 = vand.u32 4294901760, %v1905_v18  ;;  %v1918_v46 = vand.u32 4294901760, %v1917_v48  ;;  %v1819_v6 = vand.u32 4294901760, %v1781_v19  ;;  %v3307_v7 = vpack.c.bf16 %v1892_v41, %v1885_v39 }
 0x31b   :  { %v1899_v50 = vand.u32 4294901760, %v1898_v51  ;;  %v1911_v8 = vand.u32 4294901760, %v1910_v20  ;;  %v1816_v24 = vand.u32 4294901760, %v1780_v33  ;;  %3302 = vmatpush3.bf16.msra.mxu0 %v4137_v16  ;;  %v3325_v31 = vpack.c.bf16 %v1917_v48, %v1910_v20 }
 0x31c   :  { %v1919_v17 = vsub.f32 %v1917_v48, %v1918_v46  ;;  %v1931_v55 = vsub.f32 %v1781_v19, %v1819_v6  ;;  %3308 = vmatpush3.bf16.msra.mxu1 %v3307_v7  ;;  %3303 = vmatprep.subr.bf16.mxu0 %v3459_v37  ;;  %v3343_v53 = vpack.c.bf16 %v1890_v14, %v1883_v38 }
 0x31d   :  { %v1912_v36 = vsub.f32 %v1910_v20, %v1911_v8  ;;  %v4142_v13 = vpack.c.bf16 %v1819_v6, %v1816_v24  ;;  %v1924_v61 = vsub.f32 %v1780_v33, %v1816_v24  ;;  %3309 = vmatprep.subr.bf16.mxu1 %v3459_v37  ;;  %v3310_v42 = vpack.c.bf16 %v1906_v40, %v1899_v50 }
 0x31e   :  { %v1920_v44 = vand.u32 4294901760, %v1919_v17  ;;  %v1932_v63 = vand.u32 4294901760, %v1931_v55  ;;  %v3346_v0 = vpack.c.bf16 %v1904_v47, %v1897_v10  ;;  %v3349_v12 = vpack.c.bf16 %v1918_v46, %v1911_v8 }
 0x31f   :  { %v1913_v23 = vand.u32 4294901760, %v1912_v36  ;;  %v1925_v32 = vand.u32 4294901760, %v1924_v61  ;;  %3305 = vmatpush3.bf16.msra.mxu0 %v4142_v13  ;;  %v3328_v34 = vpack.c.bf16 %v1931_v55, %v1924_v61 }
 0x320   :  { %v1933_v27 = vsub.f32 %v1931_v55, %v1932_v63  ;;  %3311 = vmatpush3.bf16.msra.mxu1 %v3310_v42 }
 0x321   :  { %v1926_v58 = vsub.f32 %v1924_v61, %v1925_v32  ;;  %3312 = vmatprep.subr.bf16.mxu1 %v3459_v37  ;;  %v3313_v14 = vpack.c.bf16 %v1920_v44, %v1913_v23  ;;  %v3352_v38 = vpack.c.bf16 %v1932_v63, %v1925_v32 }
 0x322   :  { %v1934_v60 = vand.u32 4294901760, %v1933_v27  ;;  %2957 = vmatmul.mubr.f32.vlgmr.msra.gmra.mrb[12].mxu0 %v1874_v52 }
 0x323   :  { %v1927_v62 = vand.u32 4294901760, %v1926_v58 }
 0x324   :  { %3314 = vmatpush3.bf16.msra.mxu1 %v3313_v14 }
 0x325   :  { %3315 = vmatprep.subr.bf16.mxu1 %v3459_v37  ;;  %v3316_v9 = vpack.c.bf16 %v1934_v60, %v1927_v62 }
 0x328   :  { %3317 = vmatpush3.bf16.msra.mxu1 %v3316_v9 }
 0x329   :  { %3318 = vmatprep.subr.bf16.mxu1 %v3459_v37 }
 0x32b   :  { %2976 = vmatmul.mubr.f32.vlgmr.msra.gmra.mrb[12].mxu1 %v4098_v57 }
 0x32c   :  { %3320 = vmatpush3.bf16.msra.mxu1 %v3319_v3  ;;  %2994 = vmatprep.mubr.msk.f32.mxu1 %vm3460_vm2, %v3461_v15 }
 0x32d   :  { %3321 = vmatprep.subr.bf16.mxu1 %v3459_v37 }
 0x330   :  { %3323 = vmatpush3.bf16.msra.mxu1 %v3322_v21 }
 0x331   :  { %3324 = vmatprep.subr.bf16.mxu1 %v3459_v37 }
 0x334   :  { %3326 = vmatpush3.bf16.msra.mxu1 %v3325_v31 }
 0x335   :  { %3327 = vmatprep.subr.bf16.mxu1 %v3459_v37 }
 0x338   :  { %3329 = vmatpush3.bf16.msra.mxu1 %v3328_v34 }
 0x339   :  { %3330 = vmatprep.subr.bf16.mxu1 %v3459_v37 }
 0x33b   :  { %2995 = vmatmul.mubr.f32.vlgmr.msra.gmra.mrb[12].mxu1 %v4101_v5 }
 0x33c   :  { %3332 = vmatpush3.bf16.msra.mxu1 %v4111_v29  ;;  %3013 = vmatprep.mubr.msk.f32.mxu1 %vm3460_vm2, %v3461_v15 }
 0x33d   :  { %3333 = vmatprep.subr.bf16.mxu1 %v3459_v37 }
 0x340   :  { %3335 = vmatpush3.bf16.msra.mxu1 %v4125_v30 }
 0x341   :  { %3336 = vmatprep.subr.bf16.mxu1 %v3459_v37 }
 0x344   :  { %3338 = vmatpush3.bf16.msra.mxu1 %v4137_v16 }
 0x345   :  { %3339 = vmatprep.subr.bf16.mxu1 %v3459_v37 }
 0x348   :  { %3341 = vmatpush3.bf16.msra.mxu1 %v4142_v13 }
 0x349   :  { %3342 = vmatprep.subr.bf16.mxu1 %v3459_v37 }
 0x34b   :  { %3014 = vmatmul.mubr.f32.vlgmr.msra.gmra.mrb[12].mxu1 %v1872_v26 }
 0x34c   :  { %3344 = vmatpush3.bf16.msra.mxu1 %v3343_v53  ;;  %3032 = vmatprep.mubr.msk.f32.mxu1 %vm3460_vm2, %v3461_v15 }
 0x34d   :  { %3345 = vmatprep.subr.bf16.mxu1 %v3459_v37 }
 0x350   :  { %3347 = vmatpush3.bf16.msra.mxu1 %v3346_v0 }
 0x351   :  { %3348 = vmatprep.subr.bf16.mxu1 %v3459_v37 }
 0x354   :  { %3350 = vmatpush3.bf16.msra.mxu1 %v3349_v12 }
 0x355   :  { %3351 = vmatprep.subr.bf16.mxu1 %v3459_v37 }
 0x358   :  { %3353 = vmatpush3.bf16.msra.mxu1 %v3352_v38 }
 0x359   :  { %3354 = vmatprep.subr.bf16.mxu1 %v3459_v37 }
 0x35b   :  { %3033 = vmatmul.mubr.f32.vlgmr.msra.gmra.mrb[12].mxu1 %v4098_v57 }
 0x35c   :  { %3356 = vmatpush3.bf16.msra.mxu1 %v4111_v29  ;;  %3051 = vmatprep.mubr.msk.f32.mxu1 %vm3460_vm2, %v3461_v15  ;;  %v1790_v29 = vshrl.u32 %v1789_v28, 7  ;;  %v1787_v15 = vpop.permute.xlu0 %1786 }
 0x35d   :  { %3357 = vmatprep.subr.bf16.mxu1 %v3459_v37 }
 0x35e   :  { %v1791_v2 = vsub.s32 0, %v1790_v29 }
 0x360   :  { %3359 = vmatpush3.bf16.msra.mxu1 %v4125_v30  ;;  %v1792_v3 = vrot.slane %v1787_v15, %v1791_v2 }
 0x361   :  { %3360 = vmatprep.subr.bf16.mxu1 %v3459_v37 }
 0x364   :  { %3362 = vmatpush3.bf16.msra.mxu1 %v4137_v16 }
 0x365   :  { %3363 = vmatprep.subr.bf16.mxu1 %v3459_v37 }
 0x368   :  { %3365 = vmatpush3.bf16.msra.mxu1 %v4142_v13 }
 0x36b   :  { %3052 = vmatmul.mubr.f32.vlgmr.msra.gmra.mrb[12].mxu1 %v4098_v57 }
 0x3f5   :  { %v1876_v5 = vpop.f32.mrb[12].mxu0 }
 0x3f6   :  { %v2958_v26 = vpop.f32.mrb[13].mxu0  ;;  %v1877_v43 = vadd.f32 %v1876_v5, %v1792_v3 }
 0x43e   :  { %v2330_v45 = vpop.f32.mrb[12].mxu1 }
 0x43f   :  { %v3391_v56 = vadd.f32 %v2330_v45, %v1877_v43  ;;  %v3053_v4 = vpop.f32.mrb[13].mxu1 }
 0x441   :  { %v2345_v30 = vmul.f32 -1.442695, %v3391_v56 }
 0x443   :  { %3454 = vpow2.f32 %v2345_v30 }
 0x44d   :  { %v3455_v35 = vpop.eup %3454 }
 0x44e   :  { %v2337_v25 = vadd.f32 1.0, %v3455_v35 }
 0x450   :  { %3456 = vrcp.f32 %v2337_v25 }
 0x45a   :  { %v3457_v37 = vpop.eup %3456 }
 0x45b   :  { %2340 = vst [vmem:[%s4199_s7] sm:$0x1] %v3457_v37 }

</bundles_post_ra>
